<compile_context>
chip_gen: v5e
topology: v5e:2x2
jax: 0.10.0
libtpu: 0.0.40
codegen_flags: <defaults>
</compile_context>

<pallas_src>
import jax
import jax.numpy as jnp
from jax.experimental import pallas as pl
from jax.experimental.pallas import tpu as pltpu


def _round_up(x, m):
    return (x + m - 1) // m * m


def _normalize_kernel(x_ref, scale_ref, bias_ref, o_ref):
    # x_ref : (block_rows, tile_hw)      data tile
    # scale_ref, bias_ref : (block_rows, 1)  per-row params, lane-broadcast
    x = x_ref[...].astype(jnp.float32)
    y = x * scale_ref[...] + bias_ref[...]
    o_ref[...] = y.astype(o_ref.dtype)


def _choose_tiles(rows, hw, in_itemsize, out_itemsize):
    """Pick (block_rows, tile_hw) so in+out blocks stay ~8 MiB total
    (-> ~16 MiB double-buffered), with dtype-aware sublane rounding."""
    sub = {4: 8, 2: 16, 1: 32}.get(in_itemsize, 8)
    per_elem = in_itemsize + out_itemsize
    budget_bytes = 8 * 1024 * 1024          # in-block + out-block per grid step
    max_elems = max(budget_bytes // per_elem, sub * 128)

    if hw * sub <= max_elems:
        # Whole spatial extent in one block: one long contiguous DMA per chunk.
        tile_hw = hw
    else:
        tile_hw = max(128, (max_elems // sub) // 128 * 128)

    max_rows = max(sub, (max_elems // tile_hw) // sub * sub)
    block_rows = min(_round_up(rows, sub), max_rows)
    return block_rows, tile_hw


def normalization(img, mean, std):
    """img: (N, C, H, W), mean/std: (C,) -> (N, C, H, W); matches the PyTorch module."""
    N, C, H, W = img.shape
    rows = N * C
    hw = H * W

    in_dtype = img.dtype
    # PyTorch promotes (int - float)/float to float; mirror that.
    out_dtype = in_dtype if jnp.issubdtype(in_dtype, jnp.floating) else jnp.float32
    in_itemsize = jnp.dtype(in_dtype).itemsize
    out_itemsize = jnp.dtype(out_dtype).itemsize

    # Fold per-channel normalization into scale/bias (tiny (C,)-sized ops).
    scale_c = 1.0 / std.astype(jnp.float32)
    bias_c = (-mean.astype(jnp.float32)) * scale_c
    # One parameter pair per (image, channel) row of the 2D slab, kept in f32.
    scale_rows = jnp.tile(scale_c, N).reshape(rows, 1)
    bias_rows = jnp.tile(bias_c, N).reshape(rows, 1)

    # Lane-dense 2D slab: rows = N*C, columns = H*W (free contiguous reshape).
    x = img.reshape(rows, hw)

    block_rows, tile_hw = _choose_tiles(rows, hw, in_itemsize, out_itemsize)

    # No padding / slicing: cdiv grid + Pallas-masked ragged trailing blocks.
    grid = (pl.cdiv(rows, block_rows), pl.cdiv(hw, tile_hw))

    cost = pl.CostEstimate(
        flops=2 * rows * hw,
        transcendentals=0,
        bytes_accessed=rows * hw * (in_itemsize + out_itemsize) + 2 * rows * 4,
    )

    out = pl.pallas_call(
        _normalize_kernel,
        out_shape=jax.ShapeDtypeStruct((rows, hw), out_dtype),
        grid_spec=pltpu.PrefetchScalarGridSpec(
            num_scalar_prefetch=0,
            grid=grid,
            in_specs=[
                pl.BlockSpec((block_rows, tile_hw), lambda i, j: (i, j)),
                pl.BlockSpec((block_rows, 1), lambda i, j: (i, 0)),
                pl.BlockSpec((block_rows, 1), lambda i, j: (i, 0)),
            ],
            out_specs=pl.BlockSpec((block_rows, tile_hw), lambda i, j: (i, j)),
        ),
        compiler_params=pltpu.CompilerParams(
            dimension_semantics=("parallel", "parallel"),
            vmem_limit_bytes=32 * 1024 * 1024,
        ),
        cost_estimate=cost,
    )(x, scale_rows, bias_rows)

    return out.reshape(N, C, H, W)


if __name__ == "__main__":
    key = jax.random.PRNGKey(0)
    k_img, k_mean, k_std = jax.random.split(key, 3)

    N, C, H, W = 2, 4, 16, 16
    img = jax.random.normal(k_img, (N, C, H, W), dtype=jnp.float32)

    # Deterministic "parameters" (the PyTorch module stores mean/std buffers).
    mean = jax.random.uniform(k_mean, (C,), dtype=jnp.float32, minval=-0.5, maxval=0.5)
    std = jax.random.uniform(k_std, (C,), dtype=jnp.float32, minval=0.5, maxval=1.5)

    out = normalization(img, mean, std)
    out = jax.block_until_ready(out)

    # Reference check against the PyTorch semantics: (img - mean)/std.
    ref = (img - mean.reshape(1, C, 1, 1)) / std.reshape(1, C, 1, 1)
    assert out.shape == img.shape
    assert out.dtype == img.dtype
    assert jnp.allclose(out, ref, atol=1e-5, rtol=1e-5), "mismatch vs reference"

    print("KERNEL_OK")
</pallas_src>

<mosaic_0001>
module attributes {stable_mosaic.version = 11 : i64} {
  func.func @_normalize_kernel(%arg0: i32, %arg1: i32, %arg2: memref<8x256xf32, #tpu.memory_space<vmem>>, %arg3: memref<8x1xf32, #tpu.memory_space<vmem>>, %arg4: memref<8x1xf32, #tpu.memory_space<vmem>>, %arg5: memref<8x256xf32, #tpu.memory_space<vmem>>) attributes {dimension_semantics = [#tpu.dimension_semantics<parallel>, #tpu.dimension_semantics<parallel>], iteration_bounds = array<i64: 1, 1>, scalar_prefetch = 0 : i64, scratch_operands = 0 : i64, tpu.core_type = #tpu.core_type<tc>, window_params = [{transform_indices = @transform_0, window_bounds = array<i64: 8, 256>}, {transform_indices = @transform_1, window_bounds = array<i64: 8, 1>}, {transform_indices = @transform_2, window_bounds = array<i64: 8, 1>}, {transform_indices = @transform_3, window_bounds = array<i64: 8, 256>}]} {
    %c0 = arith.constant 0 : index
    %c0_0 = arith.constant 0 : index
    %0 = vector.load %arg2[%c0, %c0_0] : memref<8x256xf32, #tpu.memory_space<vmem>>, vector<8x256xf32>
    %c0_1 = arith.constant 0 : index
    %c0_2 = arith.constant 0 : index
    %1 = vector.load %arg3[%c0_1, %c0_2] : memref<8x1xf32, #tpu.memory_space<vmem>>, vector<8x1xf32>
    %2 = vector.broadcast %1 : vector<8x1xf32> to vector<8x256xf32>
    %3 = arith.mulf %0, %2 : vector<8x256xf32>
    %c0_3 = arith.constant 0 : index
    %c0_4 = arith.constant 0 : index
    %4 = vector.load %arg4[%c0_3, %c0_4] : memref<8x1xf32, #tpu.memory_space<vmem>>, vector<8x1xf32>
    %5 = vector.broadcast %4 : vector<8x1xf32> to vector<8x256xf32>
    %6 = arith.addf %3, %5 : vector<8x256xf32>
    %c0_5 = arith.constant 0 : index
    %c0_6 = arith.constant 0 : index
    %7 = vector.load %arg5[%c0_5, %c0_6] : memref<8x256xf32, #tpu.memory_space<vmem>>, vector<8x256xf32>
    tpu.vector_store %arg5[%c0_5, %c0_6], %6 {strides = array<i32>} : memref<8x256xf32, #tpu.memory_space<vmem>>, vector<8x256xf32>,
    return
  }
  func.func @transform_0(%arg0: i32, %arg1: i32) -> (i32, i32) {
    %c0_i32 = arith.constant 0 : i32
    return %arg0, %arg1 : i32, i32
  }
  func.func @transform_1(%arg0: i32, %arg1: i32) -> (i32, i32) {
    %c0_i32 = arith.constant 0 : i32
    %c0_i32_0 = arith.constant 0 : i32
    return %arg0, %c0_i32 : i32, i32
  }
  func.func @transform_2(%arg0: i32, %arg1: i32) -> (i32, i32) {
    %c0_i32 = arith.constant 0 : i32
    %c0_i32_0 = arith.constant 0 : i32
    return %arg0, %c0_i32 : i32, i32
  }
  func.func @transform_3(%arg0: i32, %arg1: i32) -> (i32, i32) {
    %c0_i32 = arith.constant 0 : i32
    return %arg0, %arg1 : i32, i32
  }
}

</mosaic_0001>

<bundles_post_ra>
// kernel: tpu_custom_call.1
= control target key start
LH: loop header
LB: loop body
LE: loop exit
PB: predicated region body
PF: predicated region fallthrough
CT: control target
= control target key end

     0   :  { %s117_s0 = inlined_call_operand.vmem [shape: f32[8,256], index: 0, kind: input, shape index: {}]   ;;  %s118_s1 = inlined_call_operand.vmem [shape: f32[8,1], index: 1, kind: input, shape index: {}]   ;;  %s119_s2 = inlined_call_operand.vmem [shape: f32[8,1], index: 2, kind: input, shape index: {}]   ;;  %s120_s3 = inlined_call_operand.hbm [shape: f32[8,256], index: 3, kind: output, shape index: {}]  }
   0x1   :  { %v17_v0 = vld [vmem:[%s118_s1] sm:$0xff] }
   0x2   :  { %8 = vsyncpa [#allocation3], 0  ;;  %v80_v1 = vmov 0   ;;  %v25_v2 = vld [vmem:[%s119_s2] sm:$0xff]  ;;  %v16_v5 = vld [vmem:[%s117_s0 + $0x8] sm:$0xff]  ;;  %s81_s1 = smov [#allocation2]  }
   0x3   :  { %53 = vset.pattern.permute.xlu0 %v80_v1  ;;  %v15_v4 = vld [vmem:[%s117_s0] sm:$0xff]  ;;  %s40_s20 = sshll.u32 %s81_s1, 4  ;;  %s42_s23 = sshll.u32 %s120_s3, 4  ;;  %s41_s20 = int_to_ptr.vmem [resolvable:$true] %s40_s20  ;;  %s43_s23 = int_to_ptr.hbm [resolvable:$true] %s42_s23 }
   0x4   :  { %20 = vperm.xlu0 %53, %v17_v0  }
   0xc   :  { %28 = vperm.xlu0 %53, %v25_v2  }
  0x76   :  { %v21_v3 = vpop.permute.xlu0 %20 }
  0x77   :  { %v23_v6 = vmul.f32 %v21_v3, %v15_v4  ;;  %v24_v7 = vmul.f32 %v21_v3, %v16_v5 }
  0x7e   :  { %v29_v8 = vpop.permute.xlu0 %28 }
  0x7f   :  { %v31_v9 = vadd.f32 %v29_v8, %v23_v6  ;;  %v32_v10 = vadd.f32 %v29_v8, %v24_v7 }
  0x81   :  { %33 = vst [vmem:[#allocation2] sm:$0xff] %v31_v9 }
  0x82   :  { %34 = vst [vmem:[#allocation2 + $0x8] sm:$0xff] %v32_v10 }
  0x83   :  { %45 = dma.vmem_to_hbm [thread:$0]  %s41_s20, 256, %s43_s23, [#allocation3]  }
  0x84   :  { %78 = dma.done.wait [#allocation3], 256  }
  0x85   :  { %79 = vsyncadd [#allocation3], 4294967040 }
  0x86   :  { %50 = vsyncpa [#allocation3], 1 }

</bundles_post_ra>
